<compile_context>
chip_gen: v7x
topology: tpu7x:2x2x1
jax: 0.10.0
libtpu: 0.0.40
codegen_flags: <defaults>
</compile_context>

<pallas_src>
import jax
import jax.numpy as jnp
from jax.experimental import pallas as pl
from jax.experimental.pallas import tpu as pltpu

_SUBLANE = 8


def _round_up(v, m):
    return ((v + m - 1) // m) * m


def vime_semi_kernel(x_ref, we_ref, be_ref, w1_ref, b1_ref, w2_ref, b2_ref,
                     out_ref):
    # x arrives f32 straight from HBM; cast to the matmul dtype (bf16 on the
    # fast path) inside VMEM so no bf16 copy of x is ever materialized in HBM.
    x = x_ref[...].astype(we_ref.dtype)

    # --- frozen encoder: Linear + sigmoid (f32 accumulation; exp -> EUP) ---
    z = jnp.dot(x, we_ref[...],
                preferred_element_type=jnp.float32) + be_ref[...]
    z = jax.nn.sigmoid(z)

    # --- predictor: Linear -> ReLU -> Linear ---
    h = jnp.dot(z.astype(w1_ref.dtype), w1_ref[...],
                preferred_element_type=jnp.float32) + b1_ref[...]
    h = jnp.maximum(h, 0.0)
    out = jnp.dot(h.astype(w2_ref.dtype), w2_ref[...],
                  preferred_element_type=jnp.float32) + b2_ref[...]

    out_ref[...] = out.astype(out_ref.dtype)


def vime_semi_forward(x, w_enc, b_enc, w1, b1, w2, b2, *,
                      batch_tile=1024, use_bf16=True):
    B, D_in = x.shape
    L = w_enc.shape[1]
    H = w1.shape[1]
    O = w2.shape[1]

    # --- hidden-dim zero padding (exact; VMEM-resident only, never in HBM) ---
    Hp = _round_up(H, 32)
    w1p = jnp.pad(w1, ((0, 0), (0, Hp - H)))
    b1p = jnp.pad(b1, ((0, 0), (0, Hp - H)))
    w2p = jnp.pad(w2, ((0, Hp - H), (0, 0)))

    # --- batch tiling: big tiles (mem-bound), but keep >=2 grid steps when
    # the batch allows it so v7x's two TensorCores both get work. ---
    B8 = _round_up(B, _SUBLANE)
    TB = min(_round_up(batch_tile, _SUBLANE), B8)
    if B8 >= 2 * _SUBLANE and (B8 + TB - 1) // TB < 2:
        TB = _round_up((B8 + 1) // 2, _SUBLANE)
    Bp = _round_up(B, TB)
    xp = x if Bp == B else jnp.pad(x, ((0, Bp - B), (0, 0)))
    grid_steps = Bp // TB

    # --- matmul-operand dtype; x stays f32 in HBM, biases/activations f32 ---
    mm_dtype = jnp.bfloat16 if use_bf16 else jnp.float32
    w_encc = w_enc.astype(mm_dtype)
    w1p = w1p.astype(mm_dtype)
    w2p = w2p.astype(mm_dtype)
    b_encc = b_enc.astype(jnp.float32)
    b1p = b1p.astype(jnp.float32)
    b2c = b2.astype(jnp.float32)

    # weights/biases: constant block index -> VMEM-resident across the grid
    resident = lambda a: pl.BlockSpec(a.shape, lambda i: (0,) * a.ndim)

    flops = 2 * Bp * (D_in * L + L * Hp + Hp * O)
    bytes_accessed = (
        Bp * D_in * 4 + Bp * O * 4 +
        w_encc.size * w_encc.dtype.itemsize +
        w1p.size * w1p.dtype.itemsize + w2p.size * w2p.dtype.itemsize +
        (b_encc.size + b1p.size + b2c.size) * 4)

    out = pl.pallas_call(
        vime_semi_kernel,
        out_shape=jax.ShapeDtypeStruct((Bp, O), jnp.float32),
        grid=(grid_steps,),
        in_specs=[
            pl.BlockSpec((TB, D_in), lambda i: (i, 0)),   # x: batch-tiled
            resident(w_encc), resident(b_encc),
            resident(w1p), resident(b1p),
            resident(w2p), resident(b2c),
        ],
        # Unpadded output block: last dim == full array dim (O), so no
        # lane-padding write amplification and no post-call lane slice.
        out_specs=pl.BlockSpec((TB, O), lambda i: (i, 0)),
        compiler_params=pltpu.CompilerParams(
            dimension_semantics=("parallel",)),
        cost_estimate=pl.CostEstimate(
            flops=flops, transcendentals=Bp * L,
            bytes_accessed=bytes_accessed),
    )(xp, w_encc, b_encc, w1p, b1p, w2p, b2c)

    return out if Bp == B else out[:B]


def vime_semi_reference(x, w_enc, b_enc, w1, b1, w2, b2):
    z = jax.nn.sigmoid(x @ w_enc + b_enc)
    h = jnp.maximum(z @ w1 + b1, 0.0)
    return h @ w2 + b2


def _uniform_init(key, shape, fan_in):
    # PyTorch nn.Linear default: U(-1/sqrt(fan_in), 1/sqrt(fan_in))
    bound = 1.0 / jnp.sqrt(jnp.float32(fan_in))
    return jax.random.uniform(key, shape, jnp.float32, -bound, bound)


if __name__ == "__main__":
    # Small, module-consistent shapes.
    batch = 8
    input_dim = 32       # raw tabular feature dim fed to the encoder
    latent_dim = 16
    output_dim = 10
    hidden_dim = output_dim + latent_dim - output_dim // 2  # = 21

    key = jax.random.PRNGKey(0)
    kx, k1, k2, k3, k4, k5, k6 = jax.random.split(key, 7)

    x = jax.random.normal(kx, (batch, input_dim), jnp.float32)

    # Frozen encoder params: Linear(input_dim, latent_dim)
    w_enc = _uniform_init(k1, (input_dim, latent_dim), input_dim)
    b_enc = _uniform_init(k2, (1, latent_dim), input_dim)
    # Predictor params
    w1 = _uniform_init(k3, (latent_dim, hidden_dim), latent_dim)
    b1 = _uniform_init(k4, (1, hidden_dim), latent_dim)
    w2 = _uniform_init(k5, (hidden_dim, output_dim), hidden_dim)
    b2 = _uniform_init(k6, (1, output_dim), hidden_dim)

    ref = vime_semi_reference(x, w_enc, b_enc, w1, b1, w2, b2)

    # f32 path: tight numerical check (hidden zero-padding is exact).
    out_f32 = vime_semi_forward(x, w_enc, b_enc, w1, b1, w2, b2,
                                use_bf16=False)
    out_f32 = jax.block_until_ready(out_f32)
    assert out_f32.shape == (batch, output_dim), out_f32.shape
    assert jnp.allclose(out_f32, ref, atol=1e-4, rtol=1e-4), (
        "f32 path mismatch vs reference")

    # bf16 matmul-operand path (default fast path): loose check.
    out_bf16 = vime_semi_forward(x, w_enc, b_enc, w1, b1, w2, b2,
                                 use_bf16=True)
    out_bf16 = jax.block_until_ready(out_bf16)
    assert out_bf16.shape == (batch, output_dim), out_bf16.shape
    assert jnp.allclose(out_bf16, ref, atol=5e-2, rtol=5e-2), (
        "bf16 path mismatch vs reference")

    # Larger batch exercises the multi-step "parallel" grid path.
    xb = jax.random.normal(kx, (2048, input_dim), jnp.float32)
    refb = vime_semi_reference(xb, w_enc, b_enc, w1, b1, w2, b2)
    outb = jax.block_until_ready(
        vime_semi_forward(xb, w_enc, b_enc, w1, b1, w2, b2, use_bf16=False))
    assert outb.shape == refb.shape
    assert jnp.allclose(outb, refb, atol=1e-4, rtol=1e-4), (
        "large-batch f32 path mismatch vs reference")

    print("KERNEL_OK")
</pallas_src>

<mosaic_0001>
module attributes {stable_mosaic.version = 11 : i64} {
  func.func @vime_semi_kernel(%arg0: i32, %arg1: memref<8x32xf32, #tpu.memory_space<vmem>>, %arg2: memref<32x16xf32, #tpu.memory_space<vmem>>, %arg3: memref<1x16xf32, #tpu.memory_space<vmem>>, %arg4: memref<16x32xf32, #tpu.memory_space<vmem>>, %arg5: memref<1x32xf32, #tpu.memory_space<vmem>>, %arg6: memref<32x10xf32, #tpu.memory_space<vmem>>, %arg7: memref<1x10xf32, #tpu.memory_space<vmem>>, %arg8: memref<8x10xf32, #tpu.memory_space<vmem>>) attributes {dimension_semantics = [#tpu.dimension_semantics<parallel>], iteration_bounds = array<i64: 1>, scalar_prefetch = 0 : i64, scratch_operands = 0 : i64, tpu.core_type = #tpu.core_type<tc>, window_params = [{transform_indices = @transform_0, window_bounds = array<i64: 8, 32>}, {pipeline_mode = #tpu.pipeline_mode<synchronous>, transform_indices = @transform_1, window_bounds = array<i64: 32, 16>}, {pipeline_mode = #tpu.pipeline_mode<synchronous>, transform_indices = @transform_2, window_bounds = array<i64: 1, 16>}, {pipeline_mode = #tpu.pipeline_mode<synchronous>, transform_indices = @transform_3, window_bounds = array<i64: 16, 32>}, {pipeline_mode = #tpu.pipeline_mode<synchronous>, transform_indices = @transform_4, window_bounds = array<i64: 1, 32>}, {pipeline_mode = #tpu.pipeline_mode<synchronous>, transform_indices = @transform_5, window_bounds = array<i64: 32, 10>}, {pipeline_mode = #tpu.pipeline_mode<synchronous>, transform_indices = @transform_6, window_bounds = array<i64: 1, 10>}, {transform_indices = @transform_7, window_bounds = array<i64: 8, 10>}]} {
    %c0 = arith.constant 0 : index
    %c0_0 = arith.constant 0 : index
    %0 = vector.load %arg1[%c0, %c0_0] : memref<8x32xf32, #tpu.memory_space<vmem>>, vector<8x32xf32>
    %c0_1 = arith.constant 0 : index
    %c0_2 = arith.constant 0 : index
    %1 = vector.load %arg2[%c0_1, %c0_2] : memref<32x16xf32, #tpu.memory_space<vmem>>, vector<32x16xf32>
    %cst = arith.constant dense<0.000000e+00> : vector<8x16xf32>
    %2 = tpu.matmul %0, %1, %cst {dimension_numbers = #tpu.dot_dimension_numbers<[1], [0], [0], [1], [0, 0, 1, 1], [], []>} : vector<8x32xf32>, vector<32x16xf32>, vector<8x16xf32> -> vector<8x16xf32>
    %c0_3 = arith.constant 0 : index
    %c0_4 = arith.constant 0 : index
    %3 = vector.load %arg3[%c0_3, %c0_4] : memref<1x16xf32, #tpu.memory_space<vmem>>, vector<1x16xf32>
    %4 = vector.broadcast %3 : vector<1x16xf32> to vector<8x16xf32>
    %5 = arith.addf %2, %4 : vector<8x16xf32>
    %6 = arith.negf %5 : vector<8x16xf32>
    %7 = math.exp %6 : vector<8x16xf32>
    %cst_5 = arith.constant 1.000000e+00 : f32
    %8 = vector.broadcast %cst_5 : f32 to vector<8x16xf32>
    %9 = arith.addf %8, %7 : vector<8x16xf32>
    %10 = arith.divf %8, %9 : vector<8x16xf32>
    %c0_6 = arith.constant 0 : index
    %c0_7 = arith.constant 0 : index
    %11 = vector.load %arg4[%c0_6, %c0_7] : memref<16x32xf32, #tpu.memory_space<vmem>>, vector<16x32xf32>
    %cst_8 = arith.constant dense<0.000000e+00> : vector<8x32xf32>
    %12 = tpu.matmul %10, %11, %cst_8 {dimension_numbers = #tpu.dot_dimension_numbers<[1], [0], [0], [1], [0, 0, 1, 1], [], []>} : vector<8x16xf32>, vector<16x32xf32>, vector<8x32xf32> -> vector<8x32xf32>
    %c0_9 = arith.constant 0 : index
    %c0_10 = arith.constant 0 : index
    %13 = vector.load %arg5[%c0_9, %c0_10] : memref<1x32xf32, #tpu.memory_space<vmem>>, vector<1x32xf32>
    %14 = vector.broadcast %13 : vector<1x32xf32> to vector<8x32xf32>
    %15 = arith.addf %12, %14 : vector<8x32xf32>
    %cst_11 = arith.constant 0.000000e+00 : f32
    %16 = vector.broadcast %cst_11 : f32 to vector<8x32xf32>
    %17 = arith.maximumf %15, %16 : vector<8x32xf32>
    %c0_12 = arith.constant 0 : index
    %c0_13 = arith.constant 0 : index
    %18 = vector.load %arg6[%c0_12, %c0_13] : memref<32x10xf32, #tpu.memory_space<vmem>>, vector<32x10xf32>
    %cst_14 = arith.constant dense<0.000000e+00> : vector<8x10xf32>
    %19 = tpu.matmul %17, %18, %cst_14 {dimension_numbers = #tpu.dot_dimension_numbers<[1], [0], [0], [1], [0, 0, 1, 1], [], []>} : vector<8x32xf32>, vector<32x10xf32>, vector<8x10xf32> -> vector<8x10xf32>
    %c0_15 = arith.constant 0 : index
    %c0_16 = arith.constant 0 : index
    %20 = vector.load %arg7[%c0_15, %c0_16] : memref<1x10xf32, #tpu.memory_space<vmem>>, vector<1x10xf32>
    %21 = vector.broadcast %20 : vector<1x10xf32> to vector<8x10xf32>
    %22 = arith.addf %19, %21 : vector<8x10xf32>
    %c0_17 = arith.constant 0 : index
    %c0_18 = arith.constant 0 : index
    %23 = vector.load %arg8[%c0_17, %c0_18] : memref<8x10xf32, #tpu.memory_space<vmem>>, vector<8x10xf32>
    tpu.vector_store %arg8[%c0_17, %c0_18], %22 {strides = array<i32>} : memref<8x10xf32, #tpu.memory_space<vmem>>, vector<8x10xf32>,
    return
  }
  func.func @transform_0(%arg0: i32) -> (i32, i32) {
    %c0_i32 = arith.constant 0 : i32
    %c0_i32_0 = arith.constant 0 : i32
    return %arg0, %c0_i32 : i32, i32
  }
  func.func @transform_1(%arg0: i32) -> (i32, i32) {
    %c0_i32 = arith.constant 0 : i32
    %c0_i32_0 = arith.constant 0 : i32
    %c0_i32_1 = arith.constant 0 : i32
    return %c0_i32, %c0_i32_0 : i32, i32
  }
  func.func @transform_2(%arg0: i32) -> (i32, i32) {
    %c0_i32 = arith.constant 0 : i32
    %c0_i32_0 = arith.constant 0 : i32
    %c0_i32_1 = arith.constant 0 : i32
    return %c0_i32, %c0_i32_0 : i32, i32
  }
  func.func @transform_3(%arg0: i32) -> (i32, i32) {
    %c0_i32 = arith.constant 0 : i32
    %c0_i32_0 = arith.constant 0 : i32
    %c0_i32_1 = arith.constant 0 : i32
    return %c0_i32, %c0_i32_0 : i32, i32
  }
  func.func @transform_4(%arg0: i32) -> (i32, i32) {
    %c0_i32 = arith.constant 0 : i32
    %c0_i32_0 = arith.constant 0 : i32
    %c0_i32_1 = arith.constant 0 : i32
    return %c0_i32, %c0_i32_0 : i32, i32
  }
  func.func @transform_5(%arg0: i32) -> (i32, i32) {
    %c0_i32 = arith.constant 0 : i32
    %c0_i32_0 = arith.constant 0 : i32
    %c0_i32_1 = arith.constant 0 : i32
    return %c0_i32, %c0_i32_0 : i32, i32
  }
  func.func @transform_6(%arg0: i32) -> (i32, i32) {
    %c0_i32 = arith.constant 0 : i32
    %c0_i32_0 = arith.constant 0 : i32
    %c0_i32_1 = arith.constant 0 : i32
    return %c0_i32, %c0_i32_0 : i32, i32
  }
  func.func @transform_7(%arg0: i32) -> (i32, i32) {
    %c0_i32 = arith.constant 0 : i32
    %c0_i32_0 = arith.constant 0 : i32
    return %arg0, %c0_i32 : i32, i32
  }
}

</mosaic_0001>

<bundles_post_ra>
// kernel: tpu_custom_call.1
= control target key start
LH: loop header
LB: loop body
LE: loop exit
PB: predicated region body
PF: predicated region fallthrough
CT: control target
= control target key end

     0   :  { %v399_v3 = vmov 0.0|0.0   ;;  %vm400_vm0 = vmmov 0   ;;  %v401_v6 = vmov 0.0   ;;  %s502_s0 = inlined_call_operand.vmem [shape: f32[8,32], index: 0, kind: input, shape index: {}]   ;;  %s503_s1 = inlined_call_operand.vmem [shape: f32[32,16], index: 1, kind: input, shape index: {}]   ;;  %s504_s2 = inlined_call_operand.vmem [shape: f32[1,16], index: 2, kind: input, shape index: {}]   ;;  %s505_s3 = inlined_call_operand.vmem [shape: f32[16,32], index: 3, kind: input, shape index: {}]   ;;  %s506_s4 = inlined_call_operand.vmem [shape: f32[1,32], index: 4, kind: input, shape index: {}]   ;;  %s507_s5 = inlined_call_operand.vmem [shape: f32[32,10], index: 5, kind: input, shape index: {}]   ;;  %s508_s6 = inlined_call_operand.vmem [shape: f32[1,10], index: 6, kind: input, shape index: {}]   ;;  %s509_s7 = inlined_call_operand.hbm [shape: f32[8,10], index: 7, kind: output, shape index: {}]  }
   0x1   :  { %v28_v0 = vld [vmem:[%s503_s1] sm:$0xff]  ;;  %v29_v1 = vld [vmem:[%s503_s1 + $0x8] sm:$0xff]  ;;  %v30_v2 = vld [vmem:[%s503_s1 + $0x10] sm:$0xff]  ;;  %352 = vmatprep.subr.bf16.mxu0 %v399_v3  ;;  %331 = vmatprep.mubr.msk.f32.mxu0 %vm400_vm0, %v401_v6 }
   0x2   :  { %v353_v4 = vpack.c.bf16 %v29_v1, %v28_v0  ;;  %v31_v5 = vld [vmem:[%s503_s1 + $0x18] sm:$0xff]  ;;  %358 = vmatprep.subr.bf16.mxu1 %v399_v3  ;;  %338 = vmatprep.mubr.msk.f32.mxu1 %vm400_vm0, %v401_v6 }
   0x3   :  { %12 = vsyncpa [#allocation3], 0  ;;  %v356_v7 = vpack.c.bf16 %v31_v5, %v30_v2  ;;  %v27_v8 = vld [vmem:[%s502_s0] sm:$0xff]  ;;  %vm39_vm1 = vcmask 261120   ;;  %v120_v10 = vld [vmem:[%s505_s3 + $0x8] sm:$0xff]  ;;  %vm128_vm2 = vcmask 130048  }
   0x4   :  { %354 = vmatpush3.bf16.msra.mxu0 %v353_v4  ;;  %v119_v9 = vld [vmem:[%s505_s3] sm:$0xff]  ;;  %v204_v20 = vld [vmem:[%s507_s5 + $0x8] sm:$0xff]  ;;  %v205_v23 = vld [vmem:[%s507_s5 + $0x10] sm:$0xff]  ;;  %s402_s25 = smov [#allocation2]   ;;  %vm287_vm3 = vcmask 80896  }
   0x5   :  { %355 = vmatprep.subr.bf16.mxu0 %v399_v3  ;;  %v359_v11 = vpack.c.bf16 %v120_v10, %v119_v9  ;;  %v303_v12 = vld [vmem:[%s504_s2] ss:$0 sm:$0xff]  ;;  %v206_v24 = vld [vmem:[%s507_s5 + $0x18] sm:$0xff]  ;;  %s295_s26 = sshll.u32 %s402_s25, 4  ;;  %s296_s26 = int_to_ptr.vmem [resolvable:$true] %s295_s26 }
   0x6   :  { %v203_v19 = vld [vmem:[%s507_s5] sm:$0xff]  ;;  %v365_v25 = vpack.c.bf16 %v206_v24, %v205_v23  ;;  %s375_s5 = scalar_lea.vmem %s296_s26, 128  ;;  %p380_p1 = scmp.lt.s32.totalorder %s296_s26, %s296_s26 }
   0x7   :  { %360 = vmatpush3.bf16.msra.mxu1 %v359_v11  ;;  %v362_v21 = vpack.c.bf16 %v204_v20, %v203_v19  ;;  %v306_v26 = vld [vmem:[%s506_s4] ss:$0 sm:$0xff]  ;;  %p376_p0 = scmp.ne.s32.totalorder %s296_s26, %s375_s5  ;;  %p381_p2 = scmp.lt.s32.totalorder %s375_s5, %s375_s5 }
   0x8   :  { %357 = vmatpush3.bf16.msra.mxu0 %v356_v7  ;;  %361 = vmatprep.subr.bf16.mxu1 %v399_v3  ;;  %v308_v31 = vld [vmem:[%s508_s6] ss:$0 sm:$0xff] }
   0x9   :  { %p382_p3 = por %p381_p2, %p380_p1 }
   0xb   :  { %332 = vmatmul.mubr.msk.f32.vlgmr.msra.gmra.mrb[0].mxu0 %vm39_vm1, %v27_v8  ;;  %p383_p4 = pnand %p382_p3, %p376_p0 }
  0xde   :  { %v109_v13 = vpop.f32.mrb[0].mxu0 }
  0xdf   :  { %v110_v14 = vadd.f32 %v303_v12, %v109_v13  ;;  %v333_v15 = vpop.f32.mrb[1].mxu0 }
  0xe1   :  { %v305_v16 = vmul.f32 -1.442695, %v110_v14 }
  0xe3   :  { %371 = vpow2.f32 %v305_v16 }
  0xed   :  { %v372_v17 = vpop.eup %371 }
  0xee   :  { %v116_v18 = vadd.f32 1.0, %v372_v17 }
  0xf0   :  { %373 = vrcp.f32 %v116_v18 }
  0xfa   :  { %v374_v22 = vpop.eup %373 }
  0xfb   :  { %339 = vmatmul.mubr.msk.f32.vlgmr.msra.gmra.mrb[0].mxu1 %vm128_vm2, %v374_v22 }
  0xfc   :  { %363 = vmatpush3.bf16.msra.mxu1 %v362_v21  ;;  %349 = vmatprep.mubr.msk.f32.mxu1 %vm400_vm0, %v401_v6 }
  0xfd   :  { %364 = vmatprep.subr.bf16.mxu1 %v399_v3 }
 0x100   :  { %366 = vmatpush3.bf16.msra.mxu1 %v365_v25 }
 0x1ce   :  { %v198_v27 = vpop.f32.mrb[0].mxu1 }
 0x1cf   :  { %v199_v28 = vadd.f32 %v306_v26, %v198_v27  ;;  %v340_v29 = vpop.f32.mrb[1].mxu1 }
 0x1d1   :  { %v202_v30 = vmax.f32 %v199_v28, 0.0 }
 0x1d3   :  { %350 = vmatmul.mubr.msk.f32.vlgmr.msra.gmra.mrb[2].mxu1 %vm39_vm1, %v202_v30 }
 0x2a6   :  { %v283_v32 = vpop.f32.mrb[2].mxu1 }
 0x2a7   :  { %v284_v33 = vadd.f32 %v308_v31, %v283_v32  ;;  %v351_v34 = vpop.f32.mrb[3].mxu1 }
 0x2a9   :  { %288 = vst.msk [vmem:[#allocation2] sm:$0xff] %vm287_vm3, %v284_v33 }
 0x2aa   :  { %386 = shalt.err (!%p383_p4)
}
 0x2ab   :  { %s387_s28 = scalar_lea.hbm %s509_s7, 128 }
 0x2ac   :  { %p388_p5 = scmp.ne.s32.totalorder %s509_s7, %s387_s28  ;;  %p391_p6 = scmp.lt.u32.totalorder %s387_s28, %s509_s7 }
 0x2ae   :  { %p393_p7 = pnand %p391_p6, %p388_p5 }
 0x2b0   :  { %396 = shalt.err (!%p393_p7)
}
 0x2b1   :  { %298 = dma.vmem_to_hbm [thread:$0]  %s296_s26, 128, %s509_s7, [#allocation3]  }
 0x2b2   :  { %397 = dma.done.wait [#allocation3], 128  }
 0x2b3   :  { %398 = vsyncadd [#allocation3], 4294967168 }
 0x2b4   :  { %302 = vsyncpa [#allocation3], 1 }

</bundles_post_ra>
